<compile_context>
chip_gen: v7x
topology: tpu7x:2x2x1
jax: 0.10.0
libtpu: 0.0.40
codegen_flags: <defaults>
</compile_context>

<pallas_src>
import functools

import jax
import jax.numpy as jnp
from jax.experimental import pallas as pl
from jax.experimental.pallas import tpu as pltpu


# ------------------------------ Pallas kernel -------------------------------

def _dconvT_in_relu_kernel(x_ref, w_ref, o_ref, *, H, W, Wp, K, eps):
    """One (batch, Cout-block) grid step of fused
    ConvTranspose2d(k=3, s=1, p=1) + InstanceNorm2d(affine=False) + ReLU.

    x_ref: (1, Cin, Hpad*Wp)  bf16  zero-padded input, channels-first, flat spatial
    w_ref: (Cb, K*K*Cin)      bf16  equivalent direct-conv weights, all taps folded into K
    o_ref: (1, Cb, H*Wp)      bf16  normalized + ReLU'd output, channels-first, flat spatial
    """
    M = H * Wp

    # In-kernel tap assembly (single HBM read): 9 static lane-shifted views of the one
    # padded slab, stacked on the contraction (sublane) axis -> ONE deep K=9*Cin matmul.
    taps = [x_ref[0, :, di * Wp + dj: di * Wp + dj + M]
            for di in range(K) for dj in range(K)]
    xcat = jnp.concatenate(taps, axis=0)                          # (K*K*Cin, M) bf16
    acc = jnp.dot(w_ref[...], xcat,
                  preferred_element_type=jnp.float32)             # (Cb, M) f32, MXU

    # InstanceNorm2d(affine=False): biased per-channel stats over the H*W *valid*
    # positions (the 2 junk columns per row introduced by width padding are masked out).
    # Single pass: sum + sum-of-squares, then one fused normalize+ReLU pass.
    col = jax.lax.broadcasted_iota(jnp.int32, (1, M), 1) % Wp
    am = jnp.where(col < W, acc, 0.0)                             # masked activations
    cnt = float(H * W)
    mean = jnp.sum(am, axis=1, keepdims=True) / cnt               # (Cb, 1)
    var = jnp.maximum(jnp.sum(am * am, axis=1, keepdims=True) / cnt - mean * mean, 0.0)
    inv = jax.lax.rsqrt(var + eps)                                # EUP (free slot)

    # Lane-dense (H*Wp >= 128) bf16 store.
    o_ref[0] = jnp.maximum(acc * inv - mean * inv, 0.0).astype(o_ref.dtype)


# ------------------------------ wrappers -------------------------------------

def prepare_params(w_t):
    """Static weight transform, hoisted out of the per-forward path.

    w_t: PyTorch ConvTranspose2d weight, shape (in_ch, ou_ch, K, K).
    Returns w_cat (ou_ch, K*K*in_ch) bf16 with
        w_cat[co, (di*K + dj)*Cin + ci] = w_t[ci, co, K-1-di, K-1-dj]
    (stride-1 transposed conv == direct conv with spatially flipped kernel and swapped
    in/out channels, pad = K-1-padding = 1).
    NOTE: the ConvTranspose2d bias is intentionally dropped -- a per-channel constant
    before InstanceNorm2d(affine=False) is exactly cancelled by the mean subtraction.
    """
    Cin, Cout, K, _ = w_t.shape
    wf = jnp.transpose(w_t[:, :, ::-1, ::-1], (2, 3, 0, 1))       # (K, K, Cin, Cout)
    w_cat = jnp.transpose(wf.reshape(K * K, Cin, Cout), (2, 0, 1))
    return w_cat.reshape(Cout, K * K * Cin).astype(jnp.bfloat16)


def decoderconv_1_forward(x_nchw, w_cat, *, eps=1e-5, cout_block=None, K=3):
    """Forward pass of decoderconv_1. Input NCHW (PyTorch layout), output NCHW bf16.
    Activations stay channels-first the whole way (no layout transposes)."""
    N, Cin, H, W = x_nchw.shape
    Cout, KKC = w_cat.shape
    assert KKC == K * K * Cin
    pad = K - 1 - 1                       # equivalent direct-conv pad for padding=1
    Wp = W + 2 * pad
    Hpad = H + 2 * pad + 1                # +1 safety row so every shifted slice is in bounds
    M = H * Wp
    Cb = Cout if cout_block is None else cout_block
    assert Cout % Cb == 0

    # bf16 BEFORE the pad (halves pad-pass bytes); single fused XLA pad, still NCHW.
    xb = x_nchw.astype(jnp.bfloat16)
    xp = jnp.pad(xb, ((0, 0), (0, 0), (pad, pad + 1), (pad, pad)))
    xf = xp.reshape(N, Cin, Hpad * Wp)    # contiguous reshape, no data movement

    out = pl.pallas_call(
        functools.partial(_dconvT_in_relu_kernel, H=H, W=W, Wp=Wp, K=K, eps=eps),
        out_shape=jax.ShapeDtypeStruct((N, Cout, M), jnp.bfloat16),
        grid=(N, Cout // Cb),
        in_specs=[
            pl.BlockSpec((1, Cin, Hpad * Wp), lambda b, j: (b, 0, 0)),
            pl.BlockSpec((Cb, KKC), lambda b, j: (j, 0)),
        ],
        out_specs=pl.BlockSpec((1, Cb, M), lambda b, j: (b, j, 0)),
        compiler_params=pltpu.CompilerParams(
            dimension_semantics=("parallel", "parallel"),
            vmem_limit_bytes=64 * 1024 * 1024),
    )(xf, w_cat)

    # Drop the 2 junk columns per spatial row (width-padding artefact); output is NCHW.
    return out.reshape(N, Cout, H, Wp)[:, :, :, :W]


# ------------------------------ reference ------------------------------------

def _reference(x_nchw, w_t, b, eps=1e-5):
    """Independent scatter-form conv-transpose + InstanceNorm + ReLU (bf16 operands,
    f32 accumulation).  Keeps the bias to demonstrate it is cancelled by the IN."""
    xb = x_nchw.astype(jnp.bfloat16).astype(jnp.float32)
    wb = w_t.astype(jnp.bfloat16).astype(jnp.float32)
    N, Cin, H, W = x_nchw.shape
    _, Cout, K, _ = w_t.shape
    full = jnp.zeros((N, Cout, H + K - 1, W + K - 1), jnp.float32)
    for ky in range(K):
        for kx in range(K):
            c = jnp.einsum('nchw,cd->ndhw', xb, wb[:, :, ky, kx],
                           precision=jax.lax.Precision.HIGHEST)
            full = full.at[:, :, ky:ky + H, kx:kx + W].add(c)
    p = 1                                                        # padding=1, out_pad=0
    y = full[:, :, p:p + H, p:p + W] + b[None, :, None, None]
    mean = y.mean(axis=(2, 3), keepdims=True)
    var = ((y - mean) ** 2).mean(axis=(2, 3), keepdims=True)
    y = (y - mean) * jax.lax.rsqrt(var + eps)
    return jnp.maximum(y, 0.0)


# --------------------------------- main ---------------------------------------

if __name__ == "__main__":
    IN_CH, OU_CH = 16, 32
    N, H, W = 2, 16, 16
    K = 3

    key = jax.random.PRNGKey(0)
    kx, kw, kb = jax.random.split(key, 3)
    x = jax.random.normal(kx, (N, IN_CH, H, W), jnp.float32)
    # PyTorch ConvTranspose2d weight layout: (in_ch, ou_ch, K, K)
    w_t = jax.random.normal(kw, (IN_CH, OU_CH, K, K), jnp.float32) * 0.1
    b = jax.random.normal(kb, (OU_CH,), jnp.float32) * 0.1      # only used by the reference

    w_cat = prepare_params(w_t)

    # cout_block=16 -> grid (N, 2): exercises the parallel Cout split (v7x dual-core).
    fwd = jax.jit(functools.partial(decoderconv_1_forward, cout_block=16))
    out = jax.block_until_ready(fwd(x, w_cat))

    assert out.shape == (N, OU_CH, H, W)
    out_f32 = out.astype(jnp.float32)
    assert bool(jnp.all(jnp.isfinite(out_f32)))

    # Reference includes the conv bias; the kernel omits it (cancelled by the IN mean
    # subtraction) -- the match validates that equivalence.  Tolerance covers the bf16
    # matmul operands and the bf16 output cast.
    ref = jax.block_until_ready(_reference(x, w_t, b))
    max_err = float(jnp.max(jnp.abs(out_f32 - ref)))
    assert max_err < 3e-2, f"max abs err vs reference: {max_err}"

    print("KERNEL_OK")
</pallas_src>

<mosaic_0001>
module attributes {stable_mosaic.version = 11 : i64} {
  func.func @_dconvT_in_relu_kernel(%arg0: i32, %arg1: i32, %arg2: memref<1x16x342xbf16, #tpu.memory_space<vmem>>, %arg3: memref<16x144xbf16, #tpu.memory_space<vmem>>, %arg4: memref<1x16x288xbf16, #tpu.memory_space<vmem>>) attributes {dimension_semantics = [#tpu.dimension_semantics<parallel>, #tpu.dimension_semantics<parallel>], iteration_bounds = array<i64: 2, 2>, scalar_prefetch = 0 : i64, scratch_operands = 0 : i64, tpu.core_type = #tpu.core_type<tc>, window_params = [{transform_indices = @transform_0, window_bounds = array<i64: 1, 16, 342>}, {transform_indices = @transform_1, window_bounds = array<i64: 16, 144>}, {transform_indices = @transform_2, window_bounds = array<i64: 1, 16, 288>}]} {
    %c0 = arith.constant 0 : index
    %c0_0 = arith.constant 0 : index
    %c0_1 = arith.constant 0 : index
    %0 = vector.load %arg2[%c0, %c0_0, %c0_1] : memref<1x16x342xbf16, #tpu.memory_space<vmem>>, vector<1x16x288xbf16>
    %1 = vector.shape_cast %0 : vector<1x16x288xbf16> to vector<16x288xbf16>
    %c0_2 = arith.constant 0 : index
    %c0_3 = arith.constant 0 : index
    %c1 = arith.constant 1 : index
    %2 = vector.load %arg2[%c0_2, %c0_3, %c1] : memref<1x16x342xbf16, #tpu.memory_space<vmem>>, vector<1x16x288xbf16>
    %3 = vector.shape_cast %2 : vector<1x16x288xbf16> to vector<16x288xbf16>
    %c0_4 = arith.constant 0 : index
    %c0_5 = arith.constant 0 : index
    %c2 = arith.constant 2 : index
    %4 = vector.load %arg2[%c0_4, %c0_5, %c2] : memref<1x16x342xbf16, #tpu.memory_space<vmem>>, vector<1x16x288xbf16>
    %5 = vector.shape_cast %4 : vector<1x16x288xbf16> to vector<16x288xbf16>
    %c0_6 = arith.constant 0 : index
    %c0_7 = arith.constant 0 : index
    %c18 = arith.constant 18 : index
    %6 = vector.load %arg2[%c0_6, %c0_7, %c18] : memref<1x16x342xbf16, #tpu.memory_space<vmem>>, vector<1x16x288xbf16>
    %7 = vector.shape_cast %6 : vector<1x16x288xbf16> to vector<16x288xbf16>
    %c0_8 = arith.constant 0 : index
    %c0_9 = arith.constant 0 : index
    %c19 = arith.constant 19 : index
    %8 = vector.load %arg2[%c0_8, %c0_9, %c19] : memref<1x16x342xbf16, #tpu.memory_space<vmem>>, vector<1x16x288xbf16>
    %9 = vector.shape_cast %8 : vector<1x16x288xbf16> to vector<16x288xbf16>
    %c0_10 = arith.constant 0 : index
    %c0_11 = arith.constant 0 : index
    %c20 = arith.constant 20 : index
    %10 = vector.load %arg2[%c0_10, %c0_11, %c20] : memref<1x16x342xbf16, #tpu.memory_space<vmem>>, vector<1x16x288xbf16>
    %11 = vector.shape_cast %10 : vector<1x16x288xbf16> to vector<16x288xbf16>
    %c0_12 = arith.constant 0 : index
    %c0_13 = arith.constant 0 : index
    %c36 = arith.constant 36 : index
    %12 = vector.load %arg2[%c0_12, %c0_13, %c36] : memref<1x16x342xbf16, #tpu.memory_space<vmem>>, vector<1x16x288xbf16>
    %13 = vector.shape_cast %12 : vector<1x16x288xbf16> to vector<16x288xbf16>
    %c0_14 = arith.constant 0 : index
    %c0_15 = arith.constant 0 : index
    %c37 = arith.constant 37 : index
    %14 = vector.load %arg2[%c0_14, %c0_15, %c37] : memref<1x16x342xbf16, #tpu.memory_space<vmem>>, vector<1x16x288xbf16>
    %15 = vector.shape_cast %14 : vector<1x16x288xbf16> to vector<16x288xbf16>
    %c0_16 = arith.constant 0 : index
    %c0_17 = arith.constant 0 : index
    %c38 = arith.constant 38 : index
    %16 = vector.load %arg2[%c0_16, %c0_17, %c38] : memref<1x16x342xbf16, #tpu.memory_space<vmem>>, vector<1x16x288xbf16>
    %17 = vector.shape_cast %16 : vector<1x16x288xbf16> to vector<16x288xbf16>
    %18 = tpu.concatenate %1, %3, %5, %7, %9, %11, %13, %15, %17 in 0 : vector<16x288xbf16>, vector<16x288xbf16>, vector<16x288xbf16>, vector<16x288xbf16>, vector<16x288xbf16>, vector<16x288xbf16>, vector<16x288xbf16>, vector<16x288xbf16>, vector<16x288xbf16> -> vector<144x288xbf16>
    %c0_18 = arith.constant 0 : index
    %c0_19 = arith.constant 0 : index
    %19 = vector.load %arg3[%c0_18, %c0_19] : memref<16x144xbf16, #tpu.memory_space<vmem>>, vector<16x144xbf16>
    %cst = arith.constant dense<0.000000e+00> : vector<16x288xf32>
    %20 = tpu.matmul %19, %18, %cst {dimension_numbers = #tpu.dot_dimension_numbers<[1], [0], [0], [1], [0, 0, 1, 1], [], []>} : vector<16x144xbf16>, vector<144x288xbf16>, vector<16x288xf32> -> vector<16x288xf32>
    %21 = tpu.iota {dimensions = array<i32: 1>} : vector<1x288xi32>
    %c18_i32 = arith.constant 18 : i32
    %c0_i32 = arith.constant 0 : i32
    %22 = arith.cmpi eq, %c18_i32, %c0_i32 : i32
    %c1_i32 = arith.constant 1 : i32
    %23 = arith.select %22, %c1_i32, %c18_i32 : i32
    %24 = vector.broadcast %23 : i32 to vector<1x288xi32>
    %25 = arith.remsi %21, %24 : vector<1x288xi32>
    %c0_i32_20 = arith.constant 0 : i32
    %26 = vector.broadcast %c0_i32_20 : i32 to vector<1x288xi32>
    %27 = arith.cmpi ne, %25, %26 : vector<1x288xi32>
    %c0_i32_21 = arith.constant 0 : i32
    %28 = vector.broadcast %c0_i32_21 : i32 to vector<1x288xi32>
    %29 = arith.cmpi slt, %25, %28 : vector<1x288xi32>
    %c0_i32_22 = arith.constant 0 : i32
    %30 = arith.cmpi slt, %23, %c0_i32_22 : i32
    %31 = vector.broadcast %30 : i1 to vector<1x288xi1>
    %32 = vector.broadcast %31 : vector<1x288xi1> to vector<1x288xi1>
    %33 = arith.xori %29, %32 : vector<1x288xi1>
    %34 = arith.andi %33, %27 : vector<1x288xi1>
    %35 = vector.broadcast %23 : i32 to vector<1x288xi32>
    %36 = arith.addi %25, %35 : vector<1x288xi32>
    %37 = arith.select %34, %36, %25 : vector<1x288xi1>, vector<1x288xi32>
    %c16_i32 = arith.constant 16 : i32
    %38 = vector.broadcast %c16_i32 : i32 to vector<1x288xi32>
    %39 = arith.cmpi slt, %37, %38 : vector<1x288xi32>
    %cst_23 = arith.constant 0.000000e+00 : f32
    %40 = vector.shape_cast %39 : vector<1x288xi1> to vector<1x288xi1>
    %41 = vector.broadcast %40 : vector<1x288xi1> to vector<16x288xi1>
    %42 = vector.broadcast %cst_23 : f32 to vector<16x288xf32>
    %43 = arith.select %41, %20, %42 : vector<16x288xi1>, vector<16x288xf32>
    %cst_24 = arith.constant dense<0.000000e+00> : vector<16xf32>
    %44 = vector.multi_reduction <add>, %43, %cst_24 [1] : vector<16x288xf32> to vector<16xf32>
    %45 = vector.shape_cast %44 : vector<16xf32> to vector<16x1xf32>
    %cst_25 = arith.constant 2.560000e+02 : f32
    %46 = vector.broadcast %cst_25 : f32 to vector<16x1xf32>
    %47 = arith.divf %45, %46 : vector<16x1xf32>
    %48 = arith.mulf %43, %43 : vector<16x288xf32>
    %cst_26 = arith.constant dense<0.000000e+00> : vector<16xf32>
    %49 = vector.multi_reduction <add>, %48, %cst_26 [1] : vector<16x288xf32> to vector<16xf32>
    %50 = vector.shape_cast %49 : vector<16xf32> to vector<16x1xf32>
    %cst_27 = arith.constant 2.560000e+02 : f32
    %51 = vector.broadcast %cst_27 : f32 to vector<16x1xf32>
    %52 = arith.divf %50, %51 : vector<16x1xf32>
    %53 = arith.mulf %47, %47 : vector<16x1xf32>
    %54 = arith.subf %52, %53 : vector<16x1xf32>
    %cst_28 = arith.constant 0.000000e+00 : f32
    %55 = vector.broadcast %cst_28 : f32 to vector<16x1xf32>
    %56 = arith.maximumf %54, %55 : vector<16x1xf32>
    %cst_29 = arith.constant 9.99999974E-6 : f32
    %57 = vector.broadcast %cst_29 : f32 to vector<16x1xf32>
    %58 = arith.addf %56, %57 : vector<16x1xf32>
    %59 = math.rsqrt %58 : vector<16x1xf32>
    %60 = vector.broadcast %59 : vector<16x1xf32> to vector<16x288xf32>
    %61 = arith.mulf %20, %60 : vector<16x288xf32>
    %62 = arith.mulf %47, %59 : vector<16x1xf32>
    %63 = vector.broadcast %62 : vector<16x1xf32> to vector<16x288xf32>
    %64 = arith.subf %61, %63 : vector<16x288xf32>
    %cst_30 = arith.constant 0.000000e+00 : f32
    %65 = vector.broadcast %cst_30 : f32 to vector<16x288xf32>
    %66 = arith.maximumf %64, %65 : vector<16x288xf32>
    %67 = arith.truncf %66 : vector<16x288xf32> to vector<16x288xbf16>
    %c0_31 = arith.constant 0 : index
    %c0_32 = arith.constant 0 : index
    %c0_33 = arith.constant 0 : index
    %68 = vector.load %arg4[%c0_31, %c0_32, %c0_33] : memref<1x16x288xbf16, #tpu.memory_space<vmem>>, vector<1x16x288xbf16>
    %69 = vector.shape_cast %68 : vector<1x16x288xbf16> to vector<16x288xbf16>
    %70 = vector.shape_cast %67 : vector<16x288xbf16> to vector<1x16x288xbf16>
    tpu.vector_store %arg4[%c0_31, %c0_32, %c0_33], %70 {strides = array<i32>} : memref<1x16x288xbf16, #tpu.memory_space<vmem>>, vector<1x16x288xbf16>,
    return
  }
  func.func @transform_0(%arg0: i32, %arg1: i32) -> (i32, i32, i32) {
    %c0_i32 = arith.constant 0 : i32
    %c0_i32_0 = arith.constant 0 : i32
    %c0_i32_1 = arith.constant 0 : i32
    return %arg0, %c0_i32, %c0_i32_0 : i32, i32, i32
  }
  func.func @transform_1(%arg0: i32, %arg1: i32) -> (i32, i32) {
    %c0_i32 = arith.constant 0 : i32
    %c0_i32_0 = arith.constant 0 : i32
    return %arg1, %c0_i32 : i32, i32
  }
  func.func @transform_2(%arg0: i32, %arg1: i32) -> (i32, i32, i32) {
    %c0_i32 = arith.constant 0 : i32
    %c0_i32_0 = arith.constant 0 : i32
    return %arg0, %arg1, %c0_i32 : i32, i32, i32
  }
}

</mosaic_0001>

<bundles_post_ra>
// kernel: decoderconv_1_forward.1
= control target key start
LH: loop header
LB: loop body
LE: loop exit
PB: predicated region body
PF: predicated region fallthrough
CT: control target
= control target key end

     0   :  { %s1565_s0 = inlined_call_operand.hbm [shape: bf16[2,16,342], index: 0, kind: input, shape index: {}]   ;;  %s1566_s1 = inlined_call_operand.hbm [shape: bf16[32,144], index: 1, kind: input, shape index: {}]   ;;  %s1567_s2 = inlined_call_operand.hbm [shape: bf16[2,32,288], index: 2, kind: output, shape index: {}]  }
   0x1   :  { %1579 = sst [smem:[#allocation17_spill]] %s1565_s0 }
   0x2   :  { %1580 = sst [smem:[#allocation18_spill]] %s1567_s2 }
   0x3   :  { %7 = vsyncpa [#allocation3], 0 }
   0x4   :  { %9 = vsyncpa [#allocation3 + $0x1], 0 }
   0x5   :  { %10 = vsyncpa [#allocation6], 0 }
   0x6   :  { %12 = vsyncpa [#allocation6 + $0x1], 0 }
   0x7   :  { %13 = vsyncpa [#allocation4], 0 }
   0x8   :  { %15 = vsyncpa [#allocation4 + $0x1], 0  ;;  %s1163_s9 = smov 0   ;;  %s1165_s10 = smov 0  }
   0x9   :  { %s1167_s11 = smov 0   ;;  %s1169_s12 = smov 0  }
   0xa   :  { %s1171_s13 = smov 0   ;;  %s1173_s14 = smov 0  }
   0xb   :  { %s1175_s15 = smov 0   ;;  %s1177_s16 = smov 0  }
   0xc   :  { %s1179_s17 = smov 0   ;;  %s1181_s18 = smov 0  }
   0xd   :  { %s1183_s19 = smov 0   ;;  %s1185_s20 = smov 0  }
   0xe   :  { %s1187_s21 = smov 0   ;;  %s1189_s22 = smov 0  }
   0xf LB: > { %1581 = sst [smem:[#allocation11_spill]] %s1116_s19  ;;  %s716_s23 = sadd.s32 4294967295, %s1128_s22   ;;  %s1128_s22 = sphi %s1189_s22, %s21_s22   ;;  %s1124_s21 = sphi %s1187_s21, %s1619_s21   ;;  %s1120_s20 = sphi %s1185_s20, %s1630_s20   ;;  %s1116_s19 = sphi %s1183_s19, %s1617_s19   ;;  %s1112_s18 = sphi %s1181_s18, %s1629_s18   ;;  %s1108_s17 = sphi %s1179_s17, %s1628_s17   ;;  %s1104_s16 = sphi %s1177_s16, %s1627_s16   ;;  %s1100_s15 = sphi %s1175_s15, %s1626_s15   ;;  %s1096_s14 = sphi %s1173_s14, %s1625_s14   ;;  %s1092_s13 = sphi %s1171_s13, %s1624_s13   ;;  %s1088_s12 = sphi %s1169_s12, %s1623_s12   ;;  %s1084_s11 = sphi %s1167_s11, %s1622_s11   ;;  %s1080_s10 = sphi %s1165_s10, %s1621_s10   ;;  %s1076_s9 = sphi %s1163_s9, %s1620_s9  }
  0x10   : > { %1582 = sst [smem:[#allocation12_spill]] %s1124_s21  ;;  %p47_p0 = scmp.ne.s32.totalorder %s1108_s17, %s1104_s16 }
  0x11   : > { %p1570_p1 = scmp.eq.s32.totalorder %s1128_s22, 0  ;;  %p53_p2 = scmp.ne.s32.totalorder %s1104_s16, %s1100_s15 }
  0x12   : > { %p1238_p3 = scmp.eq.s32.totalorder %s716_s23, 0  ;;  %p1242_p4 = scmp.eq.s32.totalorder %s716_s23, 3 }
  0x13   : > { %p49_p5 = por %p1570_p1, %p47_p0  ;;  %p1569_p7 = scmp.lt.s32.totalorder %s1128_s22, 4 }
  0x14   : > { %s1584_s27 = scalar_select %p1242_p4, 1, 0 }
  0x15   : > { %p1250_p6 = por %p1238_p3, %p53_p2  ;;  %s131_s29 = sand.u32 1, %s1108_s17  }
  0x16   : > { %s750_s30 = smul.u32 384, %s1124_s21  ;;  %s1586_s0 = sld [smem:[#allocation17_spill]] }
  0x17   : > { %s1585_s28 = scalar_select %p1250_p6, 1, 0 }
  0x18   : > { %s749_s3 = smul.u32 24, %s131_s29  ;;  %p1264_p8 = pnand %p1569_p7, %p49_p5 }
  0x19   : > { %s1270_s23 = scalar_lea.sflag [#allocation3], %s131_s29 }
  0x1a   : > { %s135_s8 = scalar_lea.vmem [#allocation2], %s749_s3  ;;  %p920_p10 = pneg %p1264_p8 }
  0x1b   : > { %s142_s15 = sshll.u32 %s135_s8, 4  ;;  %s1268_s15 = int_to_ptr.vmem [resolvable:$true] %s142_s15 }
  0x1c   : > { %s1260_s6 = scalar_lea.hbm %s1586_s0, %s750_s30  ;;  %s923_s25 = scalar_lea.hbm %s1586_s0, 768 }
  0x1d   : > { %s918_s4 = scalar_lea.hbm %s1260_s6, 384  ;;  %p924_p13 = scmp.lt.u32.totalorder %s1260_s6, %s1586_s0 }
  0x1e   : > { %p919_p9 = scmp.ne.s32.totalorder %s1260_s6, %s918_s4  ;;  %p925_p0 = scmp.lt.u32.totalorder %s923_s25, %s918_s4 }
  0x1f   : > { %p927_p5 = scmp.lt.u32.totalorder %s918_s4, %s1260_s6 }
  0x20   : > { %p921_p11 = pnand %p920_p10, %p919_p9  ;;  %p926_p2 = por %p925_p0, %p924_p13 }
  0x22   : > { %p922_p12 = pneg %p921_p11  ;;  %p928_p7 = por %p927_p5, %p926_p2 }
  0x24   : > { %p929_p1 = pnand %p928_p7, %p922_p12 }
  0x26   : > { %932 = shalt.err (!%p929_p1)
}
  0x27   : > { %s933_s29 = scalar_lea.vmem %s1268_s15, 384  ;;  %s1130_s3 = smov [#allocation2]  }
  0x28   : > { %p934_p9 = scmp.ne.s32.totalorder %s1268_s15, %s933_s29  ;;  %s938_s8 = sshll.u32 %s1130_s3, 4  ;;  %s939_s8 = int_to_ptr.vmem [resolvable:$false] %s938_s8 }
  0x29   : > { %s940_s2 = scalar_lea.vmem %s939_s8, 768  ;;  %p941_p4 = scmp.lt.s32.totalorder %s1268_s15, %s939_s8 }
  0x2a   : > { %p936_p11 = pnand %p934_p9, %p920_p10  ;;  %p942_p13 = scmp.lt.s32.totalorder %s940_s2, %s933_s29 }
  0x2c   : > { %p937_p6 = pneg %p936_p11  ;;  %p943_p0 = por %p942_p13, %p941_p4 }
  0x2e   : > { %p944_p2 = pnand %p943_p0, %p937_p6 }
  0x30   : > { %947 = shalt.err (!%p944_p2)
}
  0x31   : > { %s1131_s24 = smov 192   ;;  %s1132_s25 = smov 12  }
  0x32   : > { %770 = dma.hbm_to_vmem [thread:$0]  (!%p1264_p8), %s1260_s6, 384, %s1268_s15, %s1270_s23, %s1131_s24, %s1131_s24, %s1132_s25  }
  0x33   : > { %p725_p1 = scmp.ge.s32.totalorder %s1128_s22, 1  ;;  %p172_p4 = scmp.lt.s32.totalorder %s1128_s22, 5 }
  0x34   : > { %s717_s30 = sadd.s32 4294967294, %s1128_s22   ;;  %s30_s5 = sadd.s32 1, %s1120_s20 }
  0x35   : > { %p1300_p6 = pnand %p725_p1, %p172_p4  ;;  %s66_s29 = sadd.s32 1, %s1096_s14 }
  0x36   : > { %p31_p7 = scmp.ge.s32.totalorder %s30_s5, 2  ;;  %p73_p10 = scmp.ne.s32.totalorder %s1096_s14, %s1092_s13 }
  0x37   : > { %p79_p12 = scmp.ne.s32.totalorder %s1092_s13, %s1088_s12  ;;  %s94_s7 = sadd.s32 1, %s1084_s11 }
  0x38   : > { %s1632_s5 = smov (%p31_p7, %s30_s5), 0  ;;  %s1590_s6 = sadd.s32 1, %s1124_s21 }
  0x39   : > { %1589 = sst [smem:[#allocation13_spill]] %s1632_s5  ;;  %s1634_s6 = smov (!%p31_p7, %s1590_s6), %s1124_s21 }
  0x3a   : > { %s63_s15 = ssub.s32 %s1120_s20, %s1632_s5  ;;  %p1591_p8 = scmp.eq.s32.totalorder %s1128_s22, 0 }
  0x3b   : > { %p35_p9 = scmp.ge.s32.totalorder %s1634_s6, 2  ;;  %p64_p11 = scmp.eq.s32.totalorder %s63_s15, 0 }
  0x3c   : > { %p1321_p5 = por %p73_p10, %p1591_p8  ;;  %p1327_p13 = por %p79_p12, %p1238_p3 }
  0x3d   : > { %p104_p0 = scmp.ne.s32.totalorder %s1084_s11, %s1080_s10  ;;  %s1636_s6 = smov (%p35_p9, %s1634_s6), 0 }
  0x3e   : > { %s1593_s12 = scalar_select %p1327_p13, 1, 0 }
  0x3f   : > { %1594 = sst [smem:[#allocation14_spill]] %s1636_s6  ;;  %s37_s8 = ssub.s32 %s1124_s21, %s1636_s6 }
  0x40   : > { %s1336_s3 = scalar_select %p64_p11, %s1096_s14, %s66_s29  }
  0x41   : > { %p1596_p2 = scmp.ne.s32.totalorder %s1584_s27, 0  ;;  %p38_p4 = scmp.eq.s32.totalorder %s37_s8, 0 }
  0x42   : > { %1595 = sst [smem:[#allocation15_spill]] %s1336_s3  ;;  %s91_s26 = sor.u32 %s63_s15, %s37_s8 }
  0x43   : > { %p1342_p1 = por %p1596_p2, %p104_p0  ;;  %p92_p3 = scmp.eq.s32.totalorder %s91_s26, 0 }
  0x44   : > { %p110_p7 = scmp.ne.s32.totalorder %s1080_s10, %s1076_s9  ;;  %s1599_s24 = sadd.s32 1, %s1108_s17 }
  0x45   : > { %s1597_s2 = scalar_select %p1342_p1, 1, 0 }
  0x46   : > { %s1351_s25 = scalar_select %p38_p4, %s1108_s17, %s1599_s24  }
  0x47   : > { %1598 = sst [smem:[#allocation16_spill]] %s1597_s2  ;;  %p111_p10 = scmp.eq.s32.totalorder %s717_s30, 3 }
  0x48   : > { %s1354_s0 = scalar_select %p92_p3, %s1084_s11, %s94_s7  }
  0x49   : > { %s152_s29 = sand.u32 1, %s1096_s14   ;;  %p1357_p12 = por %p111_p10, %p110_p7 }
  0x4a   : > { %s721_s5 = sshll.u32 %s152_s29, 4  ;;  %s744_s6 = sshll.u32 %s1120_s20, 8 }
  0x4b   : > { %s1600_s27 = scalar_select %p1357_p12, 1, 0 }
  0x4c   : > { %s156_s21 = scalar_lea.vmem [#allocation5], %s721_s5  ;;  %s1365_s15 = scalar_lea.hbm %s1566_s1, %s744_s6 }
  0x4d   : > { %s164_s3 = sshll.u32 %s156_s21, 4  ;;  %p1601_p8 = scmp.lt.s32.totalorder %s1128_s22, 4  ;;  %s1367_s3 = int_to_ptr.vmem [resolvable:$true] %s164_s3 }
  0x4e   : > { %s1377_s21 = scalar_lea.sflag [#allocation6], %s152_s29  ;;  %s948_s5 = scalar_lea.hbm %s1365_s15, 256 }
  0x4f   : > { %p1373_p9 = pnand %p1601_p8, %p1321_p5  ;;  %p949_p11 = scmp.ne.s32.totalorder %s1365_s15, %s948_s5 }
  0x50   : > { %s953_s6 = scalar_lea.hbm %s1566_s1, 512  ;;  %p954_p5 = scmp.lt.u32.totalorder %s1365_s15, %s1566_s1 }
  0x51   : > { %p950_p0 = pneg %p1373_p9  ;;  %p955_p3 = scmp.lt.u32.totalorder %s953_s6, %s948_s5 }
  0x52   : > { %p957_p10 = scmp.lt.u32.totalorder %s948_s5, %s1365_s15 }
  0x53   : > { %p951_p2 = pnand %p950_p0, %p949_p11  ;;  %p956_p7 = por %p955_p3, %p954_p5 }
  0x55   : > { %p952_p4 = pneg %p951_p2  ;;  %p958_p8 = por %p957_p10, %p956_p7 }
  0x57   : > { %p959_p12 = pnand %p958_p8, %p952_p4 }
  0x59   : > { %962 = shalt.err (!%p959_p12)
}
  0x5a   : > { %s963_s2 = scalar_lea.vmem %s1367_s3, 256  ;;  %s1133_s26 = smov [#allocation5]  }
  0x5b   : > { %p964_p11 = scmp.ne.s32.totalorder %s1367_s3, %s963_s2  ;;  %s968_s24 = sshll.u32 %s1133_s26, 4  ;;  %s969_s24 = int_to_ptr.vmem [resolvable:$false] %s968_s24 }
  0x5c   : > { %s970_s29 = scalar_lea.vmem %s969_s24, 512  ;;  %p971_p13 = scmp.lt.s32.totalorder %s1367_s3, %s969_s24 }
  0x5d   : > { %p966_p2 = pnand %p964_p11, %p950_p0  ;;  %p972_p5 = scmp.lt.s32.totalorder %s970_s29, %s963_s2 }
  0x5f   : > { %p967_p1 = pneg %p966_p2  ;;  %p973_p3 = por %p972_p5, %p971_p13 }
  0x61   : > { %p974_p7 = pnand %p973_p3, %p967_p1 }
  0x63   : > { %977 = shalt.err (!%p974_p7)
}
  0x64   : > { %s1134_s5 = smov 128   ;;  %s1135_s19 = smov 8  }
  0x65   : > { %773 = dma.hbm_to_vmem [thread:$0]  (!%p1373_p9), %s1365_s15, 256, %s1367_s3, %s1377_s21, %s1134_s5, %s1134_s5, %s1135_s19  }
  0x66   : > { %176 = sbr.rel (%p1300_p6) target bundleno = 690 (0x2b2), region = 28  ;;  %s178_s7 = sand.u32 (!%p1300_p6), 1, %s1104_s16  }
  0x67   : > { %s751_s6 = smul.u32 (!%p1300_p6), 24, %s178_s7  ;;  %s179_s23 = scalar_lea.sflag (!%p1300_p6), [#allocation3], %s178_s7 }
  0x68   : > { %p1603_p13 = scmp.ne.s32.totalorder (!%p1300_p6), %s1585_s28, 0 }
  0x69   : > { %s182_s8 = scalar_lea.vmem (!%p1300_p6), [#allocation2], %s751_s6 }
  0x6d   : > { %1063 = dma.done.wait (%p1603_p13), %s179_s23, 384  }
  0x6e   : > { %1065 = vsyncadd (%p1603_p13), %s179_s23, 4294966912  ;;  %s187_s2 = sand.u32 1, %s1092_s13   ;;  %p1604_p6 = scmp.ne.s32.totalorder %s1593_s12, 0 }
  0x6f   : > { %s1413_s26 = sshll.u32 %s187_s2, 4  ;;  %s188_s3 = scalar_lea.sflag [#allocation6], %s187_s2 }
  0x70   : > { %s191_s4 = scalar_lea.vmem [#allocation5], %s1413_s26 }
  0x71   : > { %1067 = dma.done.wait (%p1604_p6), %s188_s3, 256  }
  0x72   : > { %1069 = vsyncadd (%p1604_p6), %s188_s3, 4294967040  ;;  %v1136_v0 = vmov 0   ;;  %v907_v1 = vld [vmem:[%s182_s8 + $0x4] ss:$12 sps:$4 sm:$0xff]   ;;  %v909_v2 = vld [vmem:[%s182_s8] ss:$12 sps:$4 sm:$0xff]   ;;  %v435_v46 = vlaneseq }
  0x73   : > { %394 = vmatprep.subr.bf16.mxu1 %v1136_v0  ;;  %s1137_s28 = smov 127   ;;  %v910_v3 = vld [vmem:[%s182_s8 + $0x8] ss:$12 sps:$4 sm:$0xff]   ;;  %351 = vmatprep.subr.bf16.mxu0 %v907_v1  ;;  %s1138_s15 = smov 126   ;;  %vm347_vm0 = vcmask 130048   ;;  %vm246_vm1 = vcmask 1039360  }
  0x74   : > { %242 = vrot.lane.b32.xlu0 %v907_v1, %s1137_s28  ;;  %240 = vrot.lane.b32.xlu1 %v909_v2, %s1137_s28  ;;  %s1139_s12 = smov 110   ;;  %s1140_s30 = smov 109   ;;  %v913_v4 = vld [vmem:[%s191_s4 + $0x4] ss:$8 sps:$4 sm:$0xff]   ;;  %vm258_vm2 = vcmask 1031168   ;;  %vm270_vm3 = vcmask 900096  }
  0x75   : > { %352 = vmatpush1.bf16.msra.mxu0 %v909_v2  ;;  %395 = vmatpush1.bf16.msra.mxu1 %v910_v3  ;;  %s1141_s21 = smov 108   ;;  %s1142_s24 = smov 92   ;;  %vm282_vm4 = vcmask 891904   ;;  %vm294_vm5 = vcmask 883712   ;;  %vm306_vm6 = vcmask 752640   ;;  %vm318_vm7 = vcmask 744448  }
  0x76   : > { %396 = vmatprep.subr.bf16.mxu1 %v1136_v0  ;;  %733 = vmatprep.mubr.msk.bf16.mxu1 %vm347_vm0, %v913_v4  ;;  %s1143_s29 = smov 91   ;;  %s1144_s5 = smov 90   ;;  %vm330_vm8 = vcmask 736256   ;;  %v911_v42 = vld [vmem:[%s191_s4] ss:$8 sps:$4 sm:$0xff]   ;;  %v436_v47 = vand.u32 127, %v435_v46 }
  0x77   : > { %732 = vmatprep.mubr.msk.bf16.mxu0 %vm347_vm0, %v913_v4  ;;  %s1609_s19 = sld [smem:[#allocation11_spill]]  ;;  %s214_s7 = sand.u32 1, %s1080_s10  }
  0x78   : > { %244 = vrot.lane.b32.xlu0 %v910_v3, %s1137_s28  ;;  %254 = vrot.lane.b32.xlu1 %v907_v1, %s1138_s15  ;;  %v438_v48 = vadd.s32 256, %v436_v47  ;;  %v437_v49 = vadd.s32 128, %v436_v47  ;;  %v1436_v52 = vmul.u32.u64.low 3817748708, %v436_v47  ;;  %v1437_v53 = vmul.u32.u64.high 3817748708, %v436_v47, %v1436_v52  ;;  %s759_s6 = smul.u32 6, %s1112_s18  ;;  %s1610_s4 = sld [smem:[#allocation16_spill]] }
  0x79   : > { %s752_s8 = smul.u32 24, %s214_s7 }
  0x7a   : > { %v1433_v50 = vmul.u32.u64.low 3817748708, %v438_v48  ;;  %v1434_v51 = vmul.u32.u64.high 3817748708, %v438_v48, %v1433_v50  ;;  %v1439_v54 = vmul.u32.u64.low 3817748708, %v437_v49  ;;  %v1440_v55 = vmul.u32.u64.high 3817748708, %v437_v49, %v1439_v54 }
  0x7b   : > { %v445_v57 = vshrl.u32 %v1437_v53, 4  ;;  %s216_s26 = scalar_lea.vmem [#allocation7], %s752_s8 }
  0x7c   : > { %256 = vrot.lane.b32.xlu0 %v910_v3, %s1138_s15  ;;  %252 = vrot.lane.b32.xlu1 %v909_v2, %s1138_s15  ;;  %v467_v56 = vshrl.u32 %v1434_v51, 4  ;;  %v456_v58 = vshrl.u32 %v1440_v55, 4  ;;  %s606_s3 = sshll.u32 %s216_s26, 4  ;;  %s1484_s3 = int_to_ptr.vmem [resolvable:$true] %s606_s3 }
  0x7d   : > { %v446_v60 = vmul.u32 18, %v445_v57  ;;  %s760_s23 = smul.u32 12, %s1609_s19 }
  0x7e   : > { %v468_v59 = vmul.u32 18, %v467_v56  ;;  %v457_v61 = vmul.u32 18, %v456_v58  ;;  %p1613_p12 = scmp.ne.s32.totalorder %s1610_s4, 0 }
  0x7f   : > { %v447_v63 = vsub.s32 %v436_v47, %v446_v60  ;;  %s603_s2 = sadd.s32 %s760_s23, %s759_s6 }
  0x80   : > { %266 = vrot.lane.b32.xlu0 %v907_v1, %s1139_s12  ;;  %268 = vrot.lane.b32.xlu1 %v910_v3, %s1139_s12  ;;  %v469_v62 = vsub.s32 %v438_v48, %v468_v59  ;;  %s740_s18 = sshll.u32 %s603_s2, 6 }
  0x81   : > { %vm472_vm11 = vcmp.ne.s32.totalorder %v447_v63, 0  ;;  %vm475_vm12 = vcmp.lt.s32.totalorder %v447_v63, 0 }
  0x82   : > { %vm474_vm9 = vcmp.ne.s32.totalorder %v469_v62, 0  ;;  %vm477_vm10 = vcmp.lt.s32.totalorder %v469_v62, 0  ;;  %vm478_vm0 = vmand %vm475_vm12, %vm472_vm11 }
  0x83   : > { %vm480_vm13 = vmand %vm477_vm10, %vm474_vm9 }
  0x84   : > { %264 = vrot.lane.b32.xlu0 %v909_v2, %s1139_s12  ;;  %278 = vrot.lane.b32.xlu1 %v907_v1, %s1140_s30  ;;  %s1611_s12 = sld [smem:[#allocation18_spill]] }
  0x88   : > { %280 = vrot.lane.b32.xlu0 %v910_v3, %s1140_s30  ;;  %276 = vrot.lane.b32.xlu1 %v909_v2, %s1140_s30 }
  0x8a   : > { %s1612_s30 = smov %s1611_s12 }
  0x8c   : > { %290 = vrot.lane.b32.xlu0 %v907_v1, %s1141_s21  ;;  %292 = vrot.lane.b32.xlu1 %v910_v3, %s1141_s21 }
  0x90   : > { %288 = vrot.lane.b32.xlu0 %v909_v2, %s1141_s21  ;;  %302 = vrot.lane.b32.xlu1 %v907_v1, %s1142_s24  ;;  %s1482_s21 = scalar_lea.hbm %s1611_s12, %s740_s18 }
  0x94   : > { %304 = vrot.lane.b32.xlu0 %v910_v3, %s1142_s24  ;;  %300 = vrot.lane.b32.xlu1 %v909_v2, %s1142_s24  ;;  %s1489_s24 = scalar_lea.sflag [#allocation4], %s214_s7 }
  0x98   : > { %314 = vrot.lane.b32.xlu0 %v907_v1, %s1143_s29  ;;  %316 = vrot.lane.b32.xlu1 %v910_v3, %s1143_s29 }
  0x9c   : > { %312 = vrot.lane.b32.xlu0 %v909_v2, %s1143_s29  ;;  %326 = vrot.lane.b32.xlu1 %v907_v1, %s1144_s5  ;;  %v483_v1 = vadd.s32 18, %v469_v62  ;;  %s978_s29 = scalar_lea.vmem %s1484_s3, 384 }
  0x9d   : > { %p979_p1 = scmp.ne.s32.totalorder %s1484_s3, %s978_s29 }
  0x9e   : > { %v486_v4 = vsel %vm480_vm13, %v483_v1, %v469_v62 }
  0x9f   : > { %p980_p9 = pnand %p979_p1, %p1613_p12 }
  0xa0   : > { %328 = vrot.lane.b32.xlu0 %v910_v3, %s1144_s5  ;;  %324 = vrot.lane.b32.xlu1 %v909_v2, %s1144_s5  ;;  %v481_v2 = vadd.s32 18, %v447_v63  ;;  %s1145_s5 = smov [#allocation7]  }
  0xa1   : > { %p981_p0 = pneg %p980_p9  ;;  %s982_s19 = sshll.u32 %s1145_s5, 4  ;;  %s983_s19 = int_to_ptr.vmem [resolvable:$false] %s982_s19 }
  0xa2   : > { %s984_s6 = scalar_lea.vmem %s983_s19, 768  ;;  %p985_p4 = scmp.lt.s32.totalorder %s1484_s3, %s983_s19 }
  0xa3   : > { %p986_p10 = scmp.lt.s32.totalorder %s984_s6, %s978_s29 }
  0xa5   : > { %p987_p8 = por %p986_p10, %p985_p4 }
  0xa7   : > { %p988_p11 = pnand %p987_p8, %p981_p0 }
  0xe6   : > { %v243_v5 = vpop.permute.xlu0 %242  ;;  %v241_v6 = vpop.permute.xlu1 %240 }
  0xe7   : > { %v247_v10 = vsel %vm246_vm1, %v241_v6, %v243_v5 }
  0xea   : > { %v245_v7 = vpop.permute.xlu0 %244  ;;  %v255_v8 = vpop.permute.xlu1 %254 }
  0xeb   : > { %397 = vmatpush1.bf16.msra.mxu1 %v245_v7  ;;  %v248_v9 = vsel %vm246_vm1, %v243_v5, %v245_v7  ;;  %v484_v5 = vsel %vm478_vm0, %v481_v2, %v447_v63 }
  0xec   : > { %353 = vmatprep.subr.bf16.mxu0 %v248_v9  ;;  %398 = vmatprep.subr.bf16.mxu1 %v1136_v0 }
  0xed   : > { %354 = vmatpush1.bf16.msra.mxu0 %v247_v10 }
  0xee   : > { %v257_v11 = vpop.permute.xlu0 %256  ;;  %v253_v12 = vpop.permute.xlu1 %252 }
  0xef   : > { %399 = vmatpush1.bf16.msra.mxu1 %v257_v11  ;;  %v260_v13 = vsel %vm258_vm2, %v255_v8, %v257_v11  ;;  %v259_v14 = vsel %vm258_vm2, %v253_v12, %v255_v8  ;;  %vm489_vm2 = vcmp.lt.s32.totalorder %v486_v4, 16 }
  0xf0   : > { %355 = vmatprep.subr.bf16.mxu0 %v260_v13  ;;  %400 = vmatprep.subr.bf16.mxu1 %v1136_v0 }
  0xf1   : > { %356 = vmatpush1.bf16.msra.mxu0 %v259_v14 }
  0xf2   : > { %v267_v15 = vpop.permute.xlu0 %266  ;;  %v269_v16 = vpop.permute.xlu1 %268 }
  0xf3   : > { %v272_v17 = vsel %vm270_vm3, %v267_v15, %v269_v16  ;;  %401 = vmatpush1.bf16.msra.mxu1 %v269_v16 }
  0xf4   : > { %357 = vmatprep.subr.bf16.mxu0 %v272_v17  ;;  %402 = vmatprep.subr.bf16.mxu1 %v1136_v0 }
  0xf6   : > { %v265_v18 = vpop.permute.xlu0 %264  ;;  %v279_v19 = vpop.permute.xlu1 %278 }
  0xf7   : > { %v271_v20 = vsel %vm270_vm3, %v265_v18, %v267_v15  ;;  %vm1447_vm3 = vcmp.lt.s32.totalorder %v484_v5, 16 }
  0xf8   : > { %358 = vmatpush1.bf16.msra.mxu0 %v271_v20 }
  0xfa   : > { %v281_v21 = vpop.permute.xlu0 %280  ;;  %v277_v22 = vpop.permute.xlu1 %276 }
  0xfb   : > { %403 = vmatpush1.bf16.msra.mxu1 %v281_v21  ;;  %v284_v23 = vsel %vm282_vm4, %v279_v19, %v281_v21  ;;  %v283_v24 = vsel %vm282_vm4, %v277_v22, %v279_v19 }
  0xfc   : > { %359 = vmatprep.subr.bf16.mxu0 %v284_v23  ;;  %404 = vmatprep.subr.bf16.mxu1 %v1136_v0 }
  0xfd   : > { %360 = vmatpush1.bf16.msra.mxu0 %v283_v24 }
  0xfe   : > { %v291_v25 = vpop.permute.xlu0 %290  ;;  %v293_v26 = vpop.permute.xlu1 %292 }
  0xff   : > { %v296_v27 = vsel %vm294_vm5, %v291_v25, %v293_v26  ;;  %405 = vmatpush1.bf16.msra.mxu1 %v293_v26 }
 0x100   : > { %361 = vmatprep.subr.bf16.mxu0 %v296_v27  ;;  %406 = vmatprep.subr.bf16.mxu1 %v1136_v0 }
 0x102   : > { %v289_v28 = vpop.permute.xlu0 %288  ;;  %v303_v29 = vpop.permute.xlu1 %302 }
 0x103   : > { %v295_v30 = vsel %vm294_vm5, %v289_v28, %v291_v25  ;;  %vm503_vm5 = vcmask 261120  }
 0x104   : > { %362 = vmatpush1.bf16.msra.mxu0 %v295_v30 }
 0x106   : > { %v305_v31 = vpop.permute.xlu0 %304  ;;  %v301_v32 = vpop.permute.xlu1 %300 }
 0x107   : > { %407 = vmatpush1.bf16.msra.mxu1 %v305_v31  ;;  %v308_v33 = vsel %vm306_vm6, %v303_v29, %v305_v31  ;;  %v307_v34 = vsel %vm306_vm6, %v301_v32, %v303_v29  ;;  %vm585_vm6 = vcmask 257024  }
 0x108   : > { %363 = vmatprep.subr.bf16.mxu0 %v308_v33  ;;  %408 = vmatprep.subr.bf16.mxu1 %v1136_v0 }
 0x109   : > { %364 = vmatpush1.bf16.msra.mxu0 %v307_v34 }
 0x10a   : > { %v315_v35 = vpop.permute.xlu0 %314  ;;  %v317_v36 = vpop.permute.xlu1 %316 }
 0x10b   : > { %v320_v37 = vsel %vm318_vm7, %v315_v35, %v317_v36  ;;  %409 = vmatpush1.bf16.msra.mxu1 %v317_v36 }
 0x10c   : > { %365 = vmatprep.subr.bf16.mxu0 %v320_v37  ;;  %410 = vmatprep.subr.bf16.mxu1 %v1136_v0  ;;  %v458_v0 = vsub.s32 %v437_v49, %v457_v61 }
 0x10e   : > { %v313_v38 = vpop.permute.xlu0 %312  ;;  %v327_v39 = vpop.permute.xlu1 %326  ;;  %vm473_vm14 = vcmp.ne.s32.totalorder %v458_v0, 0  ;;  %vm476_vm15 = vcmp.lt.s32.totalorder %v458_v0, 0  ;;  %v482_v3 = vadd.s32 18, %v458_v0 }
 0x10f   : > { %v319_v40 = vsel %vm318_vm7, %v313_v38, %v315_v35  ;;  %vm479_vm1 = vmand %vm476_vm15, %vm473_vm14 }
 0x110   : > { %366 = vmatpush1.bf16.msra.mxu0 %v319_v40  ;;  %v485_v6 = vsel %vm479_vm1, %v482_v3, %v458_v0 }
 0x111   : > { %vm1452_vm4 = vcmp.lt.s32.totalorder %v485_v6, 16 }
 0x112   : > { %v329_v41 = vpop.permute.xlu0 %328  ;;  %v325_v43 = vpop.permute.xlu1 %324 }
 0x113   : > { %411 = vmatpush1.bf16.msra.mxu1 %v329_v41  ;;  %v332_v44 = vsel %vm330_vm8, %v327_v39, %v329_v41  ;;  %v331_v45 = vsel %vm330_vm8, %v325_v43, %v327_v39 }
 0x114   : > { %367 = vmatprep.subr.bf16.mxu0 %v332_v44 }
 0x115   : > { %368 = vmatpush1.bf16.msra.mxu0 %v331_v45 }
 0x116   : > { %427 = vmatmul.mubr.bf16.vlgmr.msra.gmra.mrb[0].mxu1 %v911_v42 }
 0x118   : > { %384 = vmatmul.mubr.bf16.vlgmr.msra.gmra.mrb[0].mxu0 %v911_v42 }
 0x1e9   : > { %v1445_v7 = vpop.f32.mrb[0].mxu1 }
 0x1ea   : > { %v498_v9 = vsel %vm489_vm2, %v1445_v7, 0.0  ;;  %v430_v10 = vpop.f32.mrb[1].mxu1 }
 0x1eb   : > { %v518_v12 = vmul.f32 %v498_v9, %v498_v9  ;;  %v385_v13 = vpop.f32.mrb[0].mxu0  ;;  %v1456_v14 = vpop.f32.mrb[2].mxu1  ;;  %v504_v22 = vsel %vm503_vm5, %v498_v9, 0.0 }
 0x1ec   : > { %v496_v15 = vsel %vm1447_vm3, %v385_v13, 0.0  ;;  %v387_v16 = vpop.f32.mrb[1].mxu0  ;;  %v501_v17 = vsel %vm489_vm2, %v1456_v14, 0.0  ;;  %v433_v18 = vpop.f32.mrb[3].mxu1 }
 0x1ed   : > { %v516_v19 = vmul.f32 %v496_v15, %v496_v15  ;;  %v389_v20 = vpop.f32.mrb[2].mxu0  ;;  %v497_v21 = vsel %vm1452_vm4, %v387_v16, 0.0  ;;  %v521_v27 = vmul.f32 %v501_v17, %v501_v17  ;;  %v523_v30 = vsel %vm503_vm5, %v518_v12, 0.0 }
 0x1ee   : > { %v499_v23 = vsel %vm1447_vm3, %v389_v20, 0.0  ;;  %v391_v24 = vpop.f32.mrb[3].mxu0  ;;  %v517_v25 = vmul.f32 %v497_v21, %v497_v21  ;;  %v502_v26 = vadd.f32 %v497_v21, %v496_v15  ;;  %v509_v35 = vsel %vm503_vm5, %v501_v17, 0.0 }
 0x1ef   : > { %v519_v28 = vmul.f32 %v499_v23, %v499_v23  ;;  %v500_v29 = vsel %vm1452_vm4, %v391_v24, 0.0  ;;  %v528_v39 = vsel %vm503_vm5, %v521_v27, 0.0 }
 0x1f0   : > { %v508_v31 = vadd.f32 %v500_v29, %v499_v23  ;;  %v520_v32 = vmul.f32 %v500_v29, %v500_v29  ;;  %v505_v33 = vadd.f32 %v504_v22, %v502_v26  ;;  %v522_v34 = vadd.f32 %v517_v25, %v516_v19 }
 0x1f2   : > { %506 = vadd.xlane.f32.xlu0 %v505_v33  ;;  %v510_v36 = vadd.f32 %v509_v35, %v508_v31  ;;  %v524_v37 = vadd.f32 %v523_v30, %v522_v34  ;;  %v527_v38 = vadd.f32 %v520_v32, %v519_v28 }
 0x1f4   : > { %511 = vadd.xlane.f32.xlu1 %v510_v36  ;;  %v529_v40 = vadd.f32 %v528_v39, %v527_v38 }
 0x1f6   : > { %525 = vadd.xlane.f32.xlu0 %v524_v37 }
 0x1fa   : > { %530 = vadd.xlane.f32.xlu0 %v529_v40 }
 0x27f   : > { %v507_v41 = vpop.xlane.xlu0 %506 }
 0x280   : > { %v514_v42 = vmul.f32 0.00390625, %v507_v41 }
 0x281   : > { %v512_v43 = vpop.xlane.xlu1 %511 }
 0x282   : > { %v534_v45 = vmul.f32 %v514_v42, %v514_v42  ;;  %v515_v46 = vmul.f32 0.00390625, %v512_v43 }
 0x283   : > { %v526_v44 = vpop.xlane.xlu0 %525 }
 0x284   : > { %v532_v47 = vmul.f32 0.00390625, %v526_v44  ;;  %v535_v50 = vmul.f32 %v515_v46, %v515_v46 }
 0x286   : > { %v536_v48 = vsub.f32 %v532_v47, %v534_v45 }
 0x287   : > { %v531_v49 = vpop.xlane.xlu0 %530 }
 0x288   : > { %v538_v51 = vmax.f32 %v536_v48, 0.0  ;;  %v533_v52 = vmul.f32 0.00390625, %v531_v49 }
 0x28a   : > { %v540_v53 = vadd.f32 1e-05, %v538_v51  ;;  %v537_v54 = vsub.f32 %v533_v52, %v535_v50 }
 0x28c   : > { %914 = vrsqrt.f32 %v540_v53  ;;  %v539_v55 = vmax.f32 %v537_v54, 0.0 }
 0x28e   : > { %v541_v56 = vadd.f32 1e-05, %v539_v55 }
 0x290   : > { %916 = vrsqrt.f32 %v541_v56 }
 0x296   : > { %v915_v57 = vpop.eup %914 }
 0x297   : > { %v544_v58 = vmul.f32 %v915_v57, %v385_v13  ;;  %v545_v59 = vmul.f32 %v915_v57, %v387_v16  ;;  %v546_v60 = vmul.f32 %v915_v57, %v1445_v7  ;;  %v550_v61 = vmul.f32 %v915_v57, %v514_v42 }
 0x299   : > { %v552_v62 = vsub.f32 %v544_v58, %v550_v61  ;;  %v553_v63 = vsub.f32 %v545_v59, %v550_v61  ;;  %v554_v0 = vsub.f32 %v546_v60, %v550_v61 }
 0x29a   : > { %v917_v1 = vpop.eup %916 }
 0x29b   : > { %v547_v2 = vmul.f32 %v917_v1, %v389_v20  ;;  %v548_v3 = vmul.f32 %v917_v1, %v391_v24  ;;  %v549_v4 = vmul.f32 %v917_v1, %v1456_v14  ;;  %v551_v5 = vmul.f32 %v917_v1, %v515_v46 }
 0x29c   : > { %v558_v6 = vmax.f32 %v552_v62, 0.0  ;;  %v559_v8 = vmax.f32 %v553_v63, 0.0  ;;  %v560_v9 = vmax.f32 %v554_v0, 0.0 }
 0x29d   : > { %v555_v10 = vsub.f32 %v547_v2, %v551_v5  ;;  %v556_v11 = vsub.f32 %v548_v3, %v551_v5  ;;  %v557_v12 = vsub.f32 %v549_v4, %v551_v5 }
 0x29e   : > { %v745_v7 = vpack.c.bf16 %v559_v8, %v558_v6  ;;  %v746_v13 = vpack.c.bf16 %v560_v9, %v560_v9 }
 0x29f   : > { %v561_v15 = vmax.f32 %v555_v10, 0.0  ;;  %v562_v16 = vmax.f32 %v556_v11, 0.0  ;;  %v563_v17 = vmax.f32 %v557_v12, 0.0 }
 0x2a0   : > { %584 = vst [vmem:[%s216_s26] sm:$0xff] %v745_v7  ;;  %586 = vst.msk [vmem:[%s216_s26 + $0x8] sm:$0xf] %vm585_vm6, %v746_v13 }
 0x2a1   : > { %v747_v14 = vpack.c.bf16 %v562_v16, %v561_v15  ;;  %v748_v18 = vpack.c.bf16 %v563_v17, %v563_v17 }
 0x2a3   : > { %587 = vst [vmem:[%s216_s26 + $0xc] sm:$0xff] %v747_v14  ;;  %588 = vst.msk [vmem:[%s216_s26 + $0x14] sm:$0xf] %vm585_vm6, %v748_v18 }
 0x2a4   : > { %991 = shalt.err (!%p988_p11)
}
 0x2a5   : > { %s992_s7 = scalar_lea.hbm %s1482_s21, 384  ;;  %s996_s2 = scalar_lea.hbm %s1612_s30, 1536 }
 0x2a6   : > { %p993_p2 = scmp.ne.s32.totalorder %s1482_s21, %s992_s7  ;;  %p997_p7 = scmp.lt.u32.totalorder %s1482_s21, %s1612_s30 }
 0x2a7   : > { %p998_p13 = scmp.lt.u32.totalorder %s996_s2, %s992_s7  ;;  %p1000_p1 = scmp.lt.u32.totalorder %s992_s7, %s1482_s21 }
 0x2a8   : > { %p994_p5 = pnand %p993_p2, %p1613_p12 }
 0x2a9   : > { %p999_p6 = por %p998_p13, %p997_p7 }
 0x2aa   : > { %p995_p3 = pneg %p994_p5 }
 0x2ab   : > { %p1001_p9 = por %p1000_p1, %p999_p6 }
 0x2ad   : > { %p1002_p0 = pnand %p1001_p9, %p995_p3 }
 0x2af   : > { %1005 = shalt.err (!%p1002_p0)
}
 0x2b0   : > { %s1146_s28 = smov 192   ;;  %s1147_s15 = smov 12  }
 0x2b1   : > { %765 = dma.vmem_to_hbm [thread:$0]  (%p1613_p12), %s1484_s3, 384, %s1482_s21, %s1489_s24, %s1146_s28, %s1146_s28, %s1147_s15  }
 0x2b2 PF: > { %p779_p4 = scmp.ge.s32.totalorder %s1128_s22, 2  ;;  %s621_s12 = sand.u32 1, %s1076_s9  }
 0x2b3   : > { %p1614_p10 = scmp.ne.s32.totalorder %s1600_s27, 0  ;;  %s622_s29 = scalar_lea.sflag [#allocation4], %s621_s12 }
 0x2b5   : > { %p775_p8 = pnand %p779_p4, %p1614_p10 }
 0x2b7   : > { %1071 = dma.done.wait (!%p775_p8), %s622_s29, 384  }
 0x2b8   : > { %1073 = vsyncadd (!%p775_p8), %s622_s29, 4294966912  ;;  %s21_s22 = sadd.s32 1, %s1128_s22   ;;  %s1616_s3 = sld [smem:[#allocation15_spill]] }
 0x2b9   : > { %p1518_p11 = scmp.ge.s32.totalorder %s21_s22, 6   ;;  %s1617_s19 = sld [smem:[#allocation12_spill]] }
 0x2ba   : > { %s1618_s27 = sld [smem:[#allocation13_spill]]  ;;  %s1619_s21 = sld [smem:[#allocation14_spill]] }
 0x2bb   : > { %s1620_s9 = smov %s1080_s10  ;;  %s1621_s10 = smov %s1084_s11 }
 0x2bc   : > { %s1622_s11 = smov %s1354_s0  ;;  %s1623_s12 = smov %s1092_s13 }
 0x2bd   : > { %s1624_s13 = smov %s1096_s14  ;;  %s1626_s15 = smov %s1104_s16 }
 0x2be   : > { %s1625_s14 = smov %s1616_s3  ;;  %s1627_s16 = smov %s1108_s17 }
 0x2bf   : > { %s1628_s17 = smov %s1351_s25  ;;  %s1629_s18 = smov %s1120_s20 }
 0x2c0   : > { %s1630_s20 = smov %s1618_s27  ;;  %20 = sbr.rel (!%p1518_p11) target bundleno = 15 (0xf), region = 86 }
 0x2c7   :  { %627 = vsyncpa [#allocation3], 1 }
 0x2c8   :  { %629 = vsyncpa [#allocation3 + $0x1], 1 }
 0x2c9   :  { %630 = vsyncpa [#allocation6], 1 }
 0x2ca   :  { %632 = vsyncpa [#allocation6 + $0x1], 1 }
 0x2cb   :  { %633 = vsyncpa [#allocation4], 1 }
 0x2cc   :  { %635 = vsyncpa [#allocation4 + $0x1], 1 }

</bundles_post_ra>
